<compile_context>
chip_gen: v7x
topology: tpu7x:2x2x1
jax: 0.10.0
libtpu: 0.0.40
codegen_flags: <defaults>
</compile_context>

<pallas_src>
import functools

import jax
import jax.numpy as jnp
from jax.experimental import pallas as pl
from jax.experimental.pallas import tpu as pltpu


# Padding constant for N not divisible by 128: exp((_PAD_NEG - 1)/T) underflows
# to exactly 0.0 in f32 for any reasonable temperature.
_PAD_NEG = -1.0e4


def _norm_softmax_loss_kernel(x_ref, row_out_ref, col_out_ref, *, inv_temp):
    """One (TM, Np) row tile of the similarity matrix -> per-tile partials.

    row_out_ref : (1, 1, 1)   sum over tile rows of (LSE_row - 2 * x_kk / T)
    col_out_ref : (1, 1, Np)  column sums of exp((x - 1) / T)

    Shared max M = 1/T drops the per-row max pass; it is safe because cosine
    similarities are <= 1 (documented module contract).  For T << 0.01 with
    rows far from 1 this could underflow a full row -- out of contract.
    """
    i = pl.program_id(0)
    tm = x_ref.shape[0]

    # Cast in-kernel (input may arrive as bf16); exp computed exactly once.
    xf = x_ref[...].astype(jnp.float32)                      # (TM, Np)
    e = jnp.exp((xf - 1.0) * inv_temp)                       # exp(x/T - M)

    row_sum = jnp.sum(e, axis=1, keepdims=True)              # (TM, 1)
    lse_row = inv_temp + jnp.log(row_sum)                    # (TM, 1)

    # Column partial sums; the epilogue finishes the column LSE.
    # (Could be offloaded to the idle MXU as ones((1,TM)) @ e if a profile ever
    # shows VALU co-binding with HBM; neutral otherwise, so keep the VPU sum.)
    col_out_ref[0] = jnp.sum(e, axis=0, keepdims=True)       # (1, Np)

    # Diagonal of this tile lives in columns [i*TM, i*TM + TM) of the tile that
    # is already resident in VMEM -- slice it out instead of streaming a second
    # (TM, TM) block from HBM.  TM is a multiple of 128, so the lane offset is
    # 128-aligned.  The mask-reduce runs only on the (TM, TM) slice.
    col_off = pl.multiple_of(i * tm, 128)
    d = x_ref[:, pl.ds(col_off, tm)].astype(jnp.float32)     # (TM, TM)
    rr = jax.lax.broadcasted_iota(jnp.int32, (tm, tm), 0)
    cc = jax.lax.broadcasted_iota(jnp.int32, (tm, tm), 1)
    diag_x = jnp.sum(jnp.where(rr == cc, d, 0.0), axis=1, keepdims=True)  # (TM,1)

    row_out_ref[0] = jnp.sum(lse_row - 2.0 * inv_temp * diag_x,
                             axis=0, keepdims=True)          # (1, 1)


def _vmem_capacity_bytes():
    """Physical VMEM per core, via get_tpu_info with a string-match fallback."""
    try:
        info = pltpu.get_tpu_info()
        for attr in ("vmem_capacity_bytes", "vmem_size_bytes", "vmem_bytes"):
            v = getattr(info, attr, None)
            if v:
                return int(v)
    except Exception:
        pass
    try:
        kind = jax.devices()[0].device_kind.lower()
    except Exception:
        kind = ""
    if any(t in kind for t in ("v6", "v5")):
        return 128 << 20          # v5e / v5p / v6e: 128 MiB per TensorCore
    if "7" in kind:               # 'tpu7x', 'tpu v7', ...: 64 MiB per TensorCore
        return 64 << 20
    return 64 << 20               # unknown chip: stay conservative


def _device_tuning():
    """(row_tile_cap, vmem_limit_bytes) derived from real VMEM capacity."""
    vmem = _vmem_capacity_bytes()
    vmem_limit = min((vmem * 3) // 4, vmem - (8 << 20))       # leave headroom
    row_cap = 1024 if vmem >= (96 << 20) else 512             # v5e/v6e vs v7x
    return row_cap, vmem_limit


def _pick_block_rows(n_pad, itemsize, row_cap, vmem_limit):
    """Largest TM (multiple of 128 dividing n_pad) whose true footprint fits.

    Per tile row: 2x double-buffered input + f32 cast + f32 exp intermediate
    ~= n_pad * (2*itemsize + 8) bytes.  Total capped at 60% of the scoped VMEM
    limit (slack for the (TM, TM) diag slice, outputs and compiler scratch).
    """
    budget = (vmem_limit * 3) // 5
    fixed = 2 * n_pad * 4 + 4096                 # double-buffered col output etc.
    per_row = n_pad * (2 * itemsize + 8)
    rows = max(128, (budget - fixed) // per_row)
    tm = int(min(row_cap, rows, n_pad))
    tm = max(128, (tm // 128) * 128)
    while tm > 128 and n_pad % tm != 0:
        tm -= 128
    return tm                                    # n_pad % 128 == 0 -> 128 divides


def _dense_reference(x, temperature=0.05):
    """Plain-XLA implementation of the PyTorch module (tiny/rectangular path)."""
    s = x.astype(jnp.float32) / temperature
    i_logsm = jax.nn.log_softmax(s, axis=1)
    j_logsm = jax.nn.log_softmax(s.T, axis=1)
    return -jnp.mean(jnp.diagonal(i_logsm)) - jnp.mean(jnp.diagonal(j_logsm))


def norm_softmax_loss(x, temperature=0.05, *, block_rows=None):
    """x: (N, N) similarity matrix in [-1, 1] (any float dtype). Scalar loss."""
    n, m = x.shape
    inv_temp = 1.0 / float(temperature)

    # Rectangular or tiny inputs: plain XLA is both simpler and faster
    # (kernel-launch + per-step overhead dominates below one (8,128)-ish tile).
    if n != m or (n < 128 and block_rows is None):
        return _dense_reference(x, temperature)

    # Pad to a multiple of 128 so the streamed, double-buffered path is kept.
    # Padded off-diagonal -> _PAD_NEG (exp underflows to 0, so real rows and
    # columns are unaffected); padded diagonal -> 1.0 (padded rows stay
    # finite).  Each padded row then contributes exactly -1/T to the row
    # partial (removed in the epilogue) and padded columns are sliced away.
    n_pad = ((n + 127) // 128) * 128
    if n_pad != n:
        x_pad = jnp.pad(x, ((0, n_pad - n), (0, n_pad - n)),
                        constant_values=_PAD_NEG)
        pad_idx = jnp.arange(n, n_pad)
        x_pad = x_pad.at[pad_idx, pad_idx].set(jnp.asarray(1.0, x_pad.dtype))
    else:
        x_pad = x

    row_cap, vmem_limit = _device_tuning()
    itemsize = jnp.dtype(x.dtype).itemsize
    tm = block_rows if block_rows is not None else _pick_block_rows(
        n_pad, itemsize, row_cap, vmem_limit)
    assert tm % 128 == 0 and n_pad % tm == 0, \
        "block_rows must be a multiple of 128 that divides the padded N"

    num_tiles = n_pad // tm
    kernel = functools.partial(_norm_softmax_loss_kernel, inv_temp=inv_temp)

    row_part, col_part = pl.pallas_call(
        kernel,
        out_shape=(
            jax.ShapeDtypeStruct((num_tiles, 1, 1), jnp.float32),
            jax.ShapeDtypeStruct((num_tiles, 1, n_pad), jnp.float32),
        ),
        grid=(num_tiles,),
        in_specs=[
            # Full-width, lane-dense row tile; the diagonal is sliced from it
            # in-kernel, so this is the only HBM input stream.
            pl.BlockSpec((tm, n_pad), lambda i: (i, 0)),
        ],
        out_specs=(
            pl.BlockSpec((1, 1, 1), lambda i: (i, 0, 0)),
            pl.BlockSpec((1, 1, n_pad), lambda i: (i, 0, 0)),
        ),
        compiler_params=pltpu.CompilerParams(
            # Per-tile partial outputs -> the single grid axis is fully
            # parallel; on v7x Mosaic shards it across both TensorCores even
            # when the tile count is odd.  Serial loop on v5e/v6e.
            dimension_semantics=("parallel",),
            vmem_limit_bytes=vmem_limit,
        ),
        cost_estimate=pl.CostEstimate(
            flops=6 * n_pad * n_pad,
            transcendentals=n_pad * n_pad + n_pad,
            bytes_accessed=n_pad * n_pad * itemsize
                           + num_tiles * (n_pad + 1) * 4,
        ),
    )(x_pad)

    # Tiny XLA epilogue: finish the column LSE with the same shared max 1/T,
    # keep only the real columns, and remove the padded rows' exact (-1/T)
    # contribution from the row partials.
    col_sum = jnp.sum(col_part, axis=0)[0, :n]                # (N,)
    col_lse_sum = jnp.sum(inv_temp + jnp.log(col_sum))        # scalar
    row_total = jnp.sum(row_part) + (n_pad - n) * inv_temp    # scalar
    return (row_total + col_lse_sum) / n


if __name__ == "__main__":
    key = jax.random.PRNGKey(0)
    N, D = 256, 64
    ka, kb = jax.random.split(key)
    a = jax.random.normal(ka, (N, D), dtype=jnp.float32)
    b = jax.random.normal(kb, (N, D), dtype=jnp.float32)
    a = a / jnp.linalg.norm(a, axis=1, keepdims=True)
    b = b / jnp.linalg.norm(b, axis=1, keepdims=True)
    x = a @ b.T                                      # (N, N) cosine sims in [-1, 1]

    ref = jax.block_until_ready(_dense_reference(x, temperature=0.05))

    # Auto-tiled path (single tile at this small size).
    out_auto = jax.block_until_ready(norm_softmax_loss(x, temperature=0.05))
    # Forced 128-row tiles: exercises multi-tile streaming, the in-tile dynamic
    # diagonal slice at a nonzero lane offset and megacore tile sharding.
    out_tiled = jax.block_until_ready(
        norm_softmax_loss(x, temperature=0.05, block_rows=128))

    # N not divisible by 128: padded path (auto tile and forced 128-row tiles).
    n2 = 200
    x2 = x[:n2, :n2]
    ref2 = jax.block_until_ready(_dense_reference(x2, temperature=0.05))
    out2 = jax.block_until_ready(norm_softmax_loss(x2, temperature=0.05))
    out2_t = jax.block_until_ready(
        norm_softmax_loss(x2, temperature=0.05, block_rows=128))

    # Native-dtype (bf16) input: the f32 cast happens inside the kernel.
    xb = x.astype(jnp.bfloat16)
    ref_b = jax.block_until_ready(_dense_reference(xb.astype(jnp.float32), 0.05))
    out_b = jax.block_until_ready(
        norm_softmax_loss(xb, temperature=0.05, block_rows=128))

    assert jnp.allclose(out_auto, ref, rtol=1e-4, atol=2e-3), (out_auto, ref)
    assert jnp.allclose(out_tiled, ref, rtol=1e-4, atol=2e-3), (out_tiled, ref)
    assert jnp.allclose(out2, ref2, rtol=1e-4, atol=2e-3), (out2, ref2)
    assert jnp.allclose(out2_t, ref2, rtol=1e-4, atol=2e-3), (out2_t, ref2)
    assert jnp.allclose(out_b, ref_b, rtol=1e-4, atol=2e-3), (out_b, ref_b)
    print("KERNEL_OK")
</pallas_src>

<mosaic_0001>
module attributes {stable_mosaic.version = 11 : i64} {
  func.func @_norm_softmax_loss_kernel(%arg0: i32, %arg1: memref<256x256xf32, #tpu.memory_space<vmem>>, %arg2: memref<1x1x1xf32, #tpu.memory_space<vmem>>, %arg3: memref<1x1x256xf32, #tpu.memory_space<vmem>>) attributes {dimension_semantics = [#tpu.dimension_semantics<parallel>], iteration_bounds = array<i64: 1>, scalar_prefetch = 0 : i64, scratch_operands = 0 : i64, tpu.core_type = #tpu.core_type<tc>, window_params = [{transform_indices = @transform_0, window_bounds = array<i64: 256, 256>}, {transform_indices = @transform_1, window_bounds = array<i64: 1, 1, 1>}, {transform_indices = @transform_2, window_bounds = array<i64: 1, 1, 256>}]} {
    %c0 = arith.constant 0 : index
    %c0_0 = arith.constant 0 : index
    %0 = vector.load %arg1[%c0, %c0_0] : memref<256x256xf32, #tpu.memory_space<vmem>>, vector<256x256xf32>
    %cst = arith.constant 1.000000e+00 : f32
    %1 = vector.broadcast %cst : f32 to vector<256x256xf32>
    %2 = arith.subf %0, %1 : vector<256x256xf32>
    %cst_1 = arith.constant 2.000000e+01 : f32
    %3 = vector.broadcast %cst_1 : f32 to vector<256x256xf32>
    %4 = arith.mulf %2, %3 : vector<256x256xf32>
    %5 = math.exp %4 : vector<256x256xf32>
    %cst_2 = arith.constant dense<0.000000e+00> : vector<256xf32>
    %6 = vector.multi_reduction <add>, %5, %cst_2 [1] : vector<256x256xf32> to vector<256xf32>
    %7 = vector.shape_cast %6 : vector<256xf32> to vector<256x1xf32>
    %8 = math.log %7 : vector<256x1xf32>
    %cst_3 = arith.constant 2.000000e+01 : f32
    %9 = vector.broadcast %cst_3 : f32 to vector<256x1xf32>
    %10 = arith.addf %9, %8 : vector<256x1xf32>
    %cst_4 = arith.constant dense<0.000000e+00> : vector<256xf32>
    %11 = vector.multi_reduction <add>, %5, %cst_4 [0] : vector<256x256xf32> to vector<256xf32>
    %12 = vector.shape_cast %11 : vector<256xf32> to vector<1x256xf32>
    %c0_5 = arith.constant 0 : index
    %c0_6 = arith.constant 0 : index
    %c0_7 = arith.constant 0 : index
    %13 = vector.load %arg3[%c0_5, %c0_6, %c0_7] : memref<1x1x256xf32, #tpu.memory_space<vmem>>, vector<1x1x256xf32>
    %14 = vector.shape_cast %13 : vector<1x1x256xf32> to vector<1x256xf32>
    %15 = vector.shape_cast %12 : vector<1x256xf32> to vector<1x1x256xf32>
    tpu.vector_store %arg3[%c0_5, %c0_6, %c0_7], %15 {strides = array<i32>} : memref<1x1x256xf32, #tpu.memory_space<vmem>>, vector<1x1x256xf32>,
    %c256_i32 = arith.constant 256 : i32
    %16 = arith.muli %arg0, %c256_i32 : i32
    %17 = tpu.assume_multiple %16, 128 : i32
    %c0_8 = arith.constant 0 : index
    %18 = arith.index_cast %17 : i32 to index
    %19 = vector.load %arg1[%c0_8, %18] : memref<256x256xf32, #tpu.memory_space<vmem>>, vector<256x256xf32>
    %20 = tpu.iota {dimensions = array<i32: 0>} : vector<256x256xi32>
    %21 = tpu.iota {dimensions = array<i32: 1>} : vector<256x256xi32>
    %22 = arith.cmpi eq, %20, %21 : vector<256x256xi32>
    %cst_9 = arith.constant 0.000000e+00 : f32
    %23 = vector.broadcast %cst_9 : f32 to vector<256x256xf32>
    %24 = arith.select %22, %19, %23 : vector<256x256xi1>, vector<256x256xf32>
    %cst_10 = arith.constant dense<0.000000e+00> : vector<256xf32>
    %25 = vector.multi_reduction <add>, %24, %cst_10 [1] : vector<256x256xf32> to vector<256xf32>
    %26 = vector.shape_cast %25 : vector<256xf32> to vector<256x1xf32>
    %cst_11 = arith.constant 4.000000e+01 : f32
    %27 = vector.broadcast %cst_11 : f32 to vector<256x1xf32>
    %28 = arith.mulf %27, %26 : vector<256x1xf32>
    %29 = arith.subf %10, %28 : vector<256x1xf32>
    %cst_12 = arith.constant dense<0.000000e+00> : vector<1xf32>
    %30 = vector.multi_reduction <add>, %29, %cst_12 [0] : vector<256x1xf32> to vector<1xf32>
    %31 = vector.shape_cast %30 : vector<1xf32> to vector<1x1xf32>
    %c0_13 = arith.constant 0 : index
    %c0_14 = arith.constant 0 : index
    %c0_15 = arith.constant 0 : index
    %32 = vector.load %arg2[%c0_13, %c0_14, %c0_15] : memref<1x1x1xf32, #tpu.memory_space<vmem>>, vector<1x1x1xf32>
    %33 = vector.shape_cast %32 : vector<1x1x1xf32> to vector<1x1xf32>
    %34 = vector.shape_cast %31 : vector<1x1xf32> to vector<1x1x1xf32>
    tpu.vector_store %arg2[%c0_13, %c0_14, %c0_15], %34 {strides = array<i32>} : memref<1x1x1xf32, #tpu.memory_space<vmem>>, vector<1x1x1xf32>,
    return
  }
  func.func @transform_0(%arg0: i32) -> (i32, i32) {
    %c0_i32 = arith.constant 0 : i32
    %c0_i32_0 = arith.constant 0 : i32
    return %arg0, %c0_i32 : i32, i32
  }
  func.func @transform_1(%arg0: i32) -> (i32, i32, i32) {
    %c0_i32 = arith.constant 0 : i32
    %c0_i32_0 = arith.constant 0 : i32
    %c0_i32_1 = arith.constant 0 : i32
    return %arg0, %c0_i32, %c0_i32_0 : i32, i32, i32
  }
  func.func @transform_2(%arg0: i32) -> (i32, i32, i32) {
    %c0_i32 = arith.constant 0 : i32
    %c0_i32_0 = arith.constant 0 : i32
    %c0_i32_1 = arith.constant 0 : i32
    return %arg0, %c0_i32, %c0_i32_0 : i32, i32, i32
  }
}

</mosaic_0001>

<bundles_post_ra>
// kernel: tpu_custom_call.1
= control target key start
LH: loop header
LB: loop body
LE: loop exit
PB: predicated region body
PF: predicated region fallthrough
CT: control target
= control target key end

     0   :  { %8 = vsyncpa [#allocation3], 0  ;;  %s1870_s0 = inlined_call_operand.hbm [shape: f32[256,256], index: 0, kind: input, shape index: {}]   ;;  %s1871_s1 = inlined_call_operand.hbm [shape: f32[1,1,1], index: 1, kind: output, shape index: {0}]   ;;  %s1872_s2 = inlined_call_operand.hbm [shape: f32[1,1,256], index: 2, kind: output, shape index: {1}]  }
   0x1   :  { %9 = vsyncpa [#allocation4], 0 }
   0x2   :  { %10 = vsyncpa [#allocation7], 0  ;;  %s1432_s9 = smov [#allocation2]   ;;  %s1360_s13 = scalar_lea.hbm %s1870_s0, 8192 }
   0x3   :  { %s16_s10 = sshll.u32 %s1432_s9, 4  ;;  %p1361_p0 = scmp.ne.s32.totalorder %s1870_s0, %s1360_s13  ;;  %s17_s10 = int_to_ptr.vmem [resolvable:$true] %s16_s10 }
   0x4   :  { %p1364_p1 = scmp.lt.u32.totalorder %s1360_s13, %s1870_s0 }
   0x6   :  { %p1366_p2 = pnand %p1364_p1, %p1361_p0 }
   0x8   :  { %1369 = shalt.err (!%p1366_p2)
}
   0x9   :  { %s1370_s18 = scalar_lea.vmem %s17_s10, 8192  ;;  %p1375_p4 = scmp.lt.s32.totalorder %s17_s10, %s17_s10 }
   0xa   :  { %p1371_p3 = scmp.ne.s32.totalorder %s17_s10, %s1370_s18  ;;  %p1376_p5 = scmp.lt.s32.totalorder %s1370_s18, %s1370_s18 }
   0xc   :  { %p1377_p6 = por %p1376_p5, %p1375_p4 }
   0xe   :  { %p1378_p7 = pnand %p1377_p6, %p1371_p3 }
  0x10   :  { %1381 = shalt.err (!%p1378_p7)
}
  0x11   :  { %s1433_s19 = smov 256   ;;  %s1434_s20 = smov 16  }
  0x12   :  { %22 = dma.hbm_to_vmem [thread:$0]  %s1870_s0, 8192, %s17_s10, [#allocation3], %s1433_s19, %s1433_s19, %s1434_s20  }
  0x13   :  { %1426 = dma.done.wait [#allocation3], 8192  }
  0x14   :  { %1427 = vsyncadd [#allocation3], 4294959104  ;;  %v618_v0 = vlaneseq  ;;  %v642_v6 = vld [vmem:[#allocation2 + $0x10] sm:$0xff]  ;;  %v644_v7 = vld [vmem:[#allocation2 + $0x20] sm:$0xff]  ;;  %s1436_s0 = smov [#allocation6]  }
  0x15   :  { %v646_v8 = vld [vmem:[#allocation2 + $0x30] sm:$0xff]  ;;  %v640_v12 = vld [vmem:[#allocation2] sm:$0xff]  ;;  %v31_v13 = vld [vmem:[#allocation2 + $0x28] sm:$0xff]  ;;  %v1102_v14 = vadd.f32 -1.0, %v644_v7  ;;  %v1100_v25 = vadd.f32 -1.0, %v642_v6  ;;  %s1083_s23 = sshll.u32 %s1436_s0, 4  ;;  %s1084_s23 = int_to_ptr.vmem [resolvable:$true] %s1083_s23 }
  0x16   :  { %v1466_v1 = vshrl.u32 %v618_v0, 7  ;;  %v1469_v2 = vand.u32 127, %v618_v0  ;;  %v1103_v16 = vadd.f32 -1.0, %v31_v13  ;;  %v27_v17 = vld [vmem:[#allocation2 + $0x8] sm:$0xff]  ;;  %v1098_v18 = vadd.f32 -1.0, %v640_v12  ;;  %v33_v19 = vld [vmem:[#allocation2 + $0x38] sm:$0xff]  ;;  %p1387_p9 = scmp.lt.s32.totalorder %s1084_s23, %s1084_s23 }
  0x17   :  { %v1104_v20 = vadd.f32 -1.0, %v646_v8  ;;  %v158_v21 = vmul.f32 20.0, %v1102_v14  ;;  %v1099_v22 = vadd.f32 -1.0, %v27_v17  ;;  %v1105_v23 = vadd.f32 -1.0, %v33_v19  ;;  %v29_v24 = vld [vmem:[#allocation2 + $0x18] sm:$0xff]  ;;  %v1479_v26 = vld [vmem:[#allocation2 + $0x50] sm:$0xff] }
  0x18   :  { %v706_v3 = vadd.s32 8, %v1466_v1  ;;  %v707_v4 = vadd.s32 16, %v1466_v1  ;;  %v708_v5 = vadd.s32 24, %v1466_v1  ;;  %vm740_vm3 = vcmp.eq.s32.totalorder %v1466_v1, %v1469_v2  ;;  %v37_v31 = vld [vmem:[#allocation2 + $0x58] sm:$0xff]  ;;  %v1481_v32 = vld [vmem:[#allocation2 + $0x40] sm:$0xff]  ;;  %v35_v37 = vld [vmem:[#allocation2 + $0x48] sm:$0xff] }
  0x19   :  { %v804_v15 = vsel %vm740_vm3, %v640_v12, 0.0  ;;  %v159_v27 = vmul.f32 20.0, %v1103_v16  ;;  %v154_v28 = vmul.f32 20.0, %v1098_v18  ;;  %v160_v29 = vmul.f32 20.0, %v1104_v20  ;;  %v1483_v44 = vld [vmem:[#allocation2 + $0x70] sm:$0xff]  ;;  %v41_v48 = vld [vmem:[#allocation2 + $0x78] sm:$0xff] }
  0x1a   :  { %vm742_vm0 = vcmp.eq.s32.totalorder %v706_v3, %v1469_v2  ;;  %vm744_vm1 = vcmp.eq.s32.totalorder %v707_v4, %v1469_v2  ;;  %vm746_vm2 = vcmp.eq.s32.totalorder %v708_v5, %v1469_v2  ;;  %869 = vadd.xlane.f32.xlu0 %v804_v15  ;;  %v1101_v30 = vadd.f32 -1.0, %v29_v24  ;;  %v1488_v58 = vld [vmem:[#allocation2 + $0x60] sm:$0xff]  ;;  %v39_v59 = vld [vmem:[#allocation2 + $0x68] sm:$0xff]  ;;  %v45_v16 = vld [vmem:[#allocation2 + $0x98] sm:$0xff]  ;;  %s1382_s24 = scalar_lea.vmem %s1084_s23, 32 }
  0x1b   :  { %v806_v9 = vsel %vm742_vm0, %v642_v6, 0.0  ;;  %v808_v10 = vsel %vm744_vm1, %v644_v7, 0.0  ;;  %v810_v11 = vsel %vm746_vm2, %v646_v8, 0.0  ;;  %v226_v33 = vmul.f32 1.442695, %v158_v21  ;;  %v1490_v63 = vld [vmem:[#allocation2 + $0x80] sm:$0xff]  ;;  %p1383_p8 = scmp.ne.s32.totalorder %s1084_s23, %s1382_s24  ;;  %p1388_p10 = scmp.lt.s32.totalorder %s1382_s24, %s1382_s24 }
  0x1c   :  { %872 = vadd.xlane.f32.xlu1 %v806_v9  ;;  %v155_v34 = vmul.f32 20.0, %v1099_v22  ;;  %v161_v35 = vmul.f32 20.0, %v1105_v23  ;;  %v156_v36 = vmul.f32 20.0, %v1100_v25  ;;  %v228_v38 = vmul.f32 1.442695, %v159_v27  ;;  %v43_v5 = vld [vmem:[#allocation2 + $0x88] sm:$0xff] }
  0x1d   :  { %v218_v39 = vmul.f32 1.442695, %v154_v28  ;;  %v230_v40 = vmul.f32 1.442695, %v160_v29  ;;  %1168 = vpow2.f32 %v226_v33  ;;  %v157_v43 = vmul.f32 20.0, %v1101_v30  ;;  %v1493_v9 = vld [vmem:[#allocation2 + $0x90] sm:$0xff]  ;;  %p1389_p11 = por %p1388_p10, %p1387_p9 }
  0x1e   :  { %v220_v41 = vmul.f32 1.442695, %v155_v34  ;;  %v232_v42 = vmul.f32 1.442695, %v161_v35  ;;  %1170 = vpow2.f32 %v228_v38  ;;  %v222_v45 = vmul.f32 1.442695, %v156_v36 }
  0x1f   :  { %v1108_v46 = vadd.f32 -1.0, %v1479_v26  ;;  %v1109_v47 = vadd.f32 -1.0, %v37_v31  ;;  %1172 = vpow2.f32 %v218_v39  ;;  %v224_v49 = vmul.f32 1.442695, %v157_v43  ;;  %v1497_v24 = vld [vmem:[#allocation2 + $0xa0] sm:$0xff]  ;;  %v47_v30 = vld [vmem:[#allocation2 + $0xa8] sm:$0xff]  ;;  %p1390_p12 = pnand %p1389_p11, %p1383_p8 }
  0x20   :  { %875 = vadd.xlane.f32.xlu1 %v808_v10  ;;  %v1106_v50 = vadd.f32 -1.0, %v1481_v32  ;;  %v1107_v51 = vadd.f32 -1.0, %v35_v37  ;;  %1174 = vpow2.f32 %v220_v41  ;;  %v1112_v54 = vadd.f32 -1.0, %v1483_v44 }
  0x21   :  { %v164_v52 = vmul.f32 20.0, %v1108_v46  ;;  %v165_v53 = vmul.f32 20.0, %v1109_v47  ;;  %1176 = vpow2.f32 %v230_v40  ;;  %v1113_v57 = vadd.f32 -1.0, %v41_v48  ;;  %v1503_v40 = vld [vmem:[#allocation2 + $0xb0] sm:$0xff] }
  0x22   :  { %v162_v55 = vmul.f32 20.0, %v1106_v50  ;;  %v163_v56 = vmul.f32 20.0, %v1107_v51  ;;  %1178 = vpow2.f32 %v232_v42  ;;  %v168_v62 = vmul.f32 20.0, %v1112_v54  ;;  %v49_v50 = vld [vmem:[#allocation2 + $0xb8] sm:$0xff] }
  0x23   :  { %v238_v60 = vmul.f32 1.442695, %v164_v52  ;;  %v240_v61 = vmul.f32 1.442695, %v165_v53  ;;  %1180 = vpow2.f32 %v222_v45  ;;  %v169_v4 = vmul.f32 20.0, %v1113_v57 }
  0x24   :  { %878 = vadd.xlane.f32.xlu1 %v810_v11  ;;  %v234_v3 = vmul.f32 1.442695, %v162_v55  ;;  %1182 = vpow2.f32 %v224_v49  ;;  %v236_v6 = vmul.f32 1.442695, %v163_v56  ;;  %v1110_v7 = vadd.f32 -1.0, %v1488_v58 }
  0x25   :  { %v1111_v8 = vadd.f32 -1.0, %v39_v59  ;;  %1184 = vpow2.f32 %v238_v60  ;;  %v246_v10 = vmul.f32 1.442695, %v168_v62  ;;  %v248_v11 = vmul.f32 1.442695, %v169_v4  ;;  %v1509_v4 = vld [vmem:[#allocation2 + $0xc0] sm:$0xff] }
  0x26   :  { %v1114_v12 = vadd.f32 -1.0, %v1490_v63  ;;  %1186 = vpow2.f32 %v240_v61  ;;  %v166_v13 = vmul.f32 20.0, %v1110_v7  ;;  %v1115_v15 = vadd.f32 -1.0, %v43_v5 }
  0x27   :  { %v167_v14 = vmul.f32 20.0, %v1111_v8  ;;  %v1169_v17 = vpop.eup %1168  ;;  %1188 = vpow2.f32 %v234_v3  ;;  %v1116_v19 = vadd.f32 -1.0, %v1493_v9  ;;  %v1117_v29 = vadd.f32 -1.0, %v45_v16 }
  0x28   :  { %v170_v18 = vmul.f32 20.0, %v1114_v12  ;;  %v1171_v20 = vpop.eup %1170  ;;  %1190 = vpow2.f32 %v236_v6  ;;  %v242_v21 = vmul.f32 1.442695, %v166_v13  ;;  %v171_v23 = vmul.f32 20.0, %v1115_v15 }
  0x29   :  { %v244_v22 = vmul.f32 1.442695, %v167_v14  ;;  %v1173_v25 = vpop.eup %1172  ;;  %v352_v27 = vadd.f32 %v1171_v20, %v1169_v17  ;;  %1192 = vpow2.f32 %v246_v10  ;;  %v1500_v33 = vadd.s32 32, %v1466_v1 }
  0x2a   :  { %v250_v28 = vmul.f32 1.442695, %v170_v18  ;;  %v1175_v31 = vpop.eup %1174  ;;  %1194 = vpow2.f32 %v248_v11  ;;  %v252_v34 = vmul.f32 1.442695, %v171_v23  ;;  %v172_v35 = vmul.f32 20.0, %v1116_v19  ;;  %v51_v11 = vld [vmem:[#allocation2 + $0xc8] sm:$0xff] }
  0x2b   :  { %v1177_v36 = vpop.eup %1176  ;;  %353 = vadd.xlane.f32.xlu1 %v352_v27  ;;  %v346_v37 = vadd.f32 %v1175_v31, %v1173_v25  ;;  %1196 = vpow2.f32 %v242_v21  ;;  %v173_v38 = vmul.f32 20.0, %v1117_v29  ;;  %v1118_v39 = vadd.f32 -1.0, %v1497_v24 }
  0x2c   :  { %v1179_v41 = vpop.eup %1178  ;;  %1198 = vpow2.f32 %v244_v22  ;;  %v1506_v42 = vadd.s32 40, %v1466_v1  ;;  %v254_v43 = vmul.f32 1.442695, %v172_v35  ;;  %v1119_v45 = vadd.f32 -1.0, %v47_v30 }
  0x2d   :  { %v1181_v46 = vpop.eup %1180  ;;  %347 = vadd.xlane.f32.xlu0 %v346_v37  ;;  %v355_v47 = vadd.f32 %v1179_v41, %v1177_v36  ;;  %1200 = vpow2.f32 %v250_v28  ;;  %v256_v48 = vmul.f32 1.442695, %v173_v38  ;;  %v174_v49 = vmul.f32 20.0, %v1118_v39 }
  0x2e   :  { %v1183_v51 = vpop.eup %1182  ;;  %v538_v52 = vadd.f32 %v1181_v46, %v1173_v25  ;;  %1202 = vpow2.f32 %v252_v34  ;;  %v175_v53 = vmul.f32 20.0, %v1119_v45  ;;  %v1120_v54 = vadd.f32 -1.0, %v1503_v40  ;;  %v53_v34 = vld [vmem:[#allocation2 + $0xd8] sm:$0xff] }
  0x2f   :  { %v1185_v55 = vpop.eup %1184  ;;  %356 = vadd.xlane.f32.xlu1 %v355_v47  ;;  %v349_v56 = vadd.f32 %v1183_v51, %v1181_v46  ;;  %v575_v57 = vadd.f32 %v1183_v51, %v1175_v31  ;;  %1204 = vpow2.f32 %v254_v43  ;;  %v258_v59 = vmul.f32 1.442695, %v174_v49  ;;  %v1520_v31 = vld [vmem:[#allocation2 + $0xd0] sm:$0xff]  ;;  %v1527_v51 = vld [vmem:[#allocation2 + $0xe0] sm:$0xff] }
  0x30   :  { %v1187_v60 = vpop.eup %1186  ;;  %v539_v61 = vadd.f32 %v1169_v17, %v538_v52  ;;  %1206 = vpow2.f32 %v256_v48  ;;  %v260_v62 = vmul.f32 1.442695, %v175_v53  ;;  %v1121_v3 = vadd.f32 -1.0, %v49_v50 }
  0x31   :  { %v1189_v5 = vpop.eup %1188  ;;  %v576_v6 = vadd.f32 %v1171_v20, %v575_v57  ;;  %350 = vadd.xlane.f32.xlu0 %v349_v56  ;;  %v361_v7 = vadd.f32 %v1187_v60, %v1185_v55  ;;  %v1512_v8 = vadd.s32 48, %v1466_v1  ;;  %v176_v10 = vmul.f32 20.0, %v1120_v54  ;;  %v55_v57 = vld [vmem:[#allocation2 + $0xe8] sm:$0xff] }
  0x32   :  { %v1191_v12 = vpop.eup %1190  ;;  %v540_v13 = vadd.f32 %v1177_v36, %v539_v61  ;;  %vm748_vm4 = vcmp.eq.s32.totalorder %v1500_v33, %v1469_v2  ;;  %1208 = vpow2.f32 %v258_v59  ;;  %v177_v14 = vmul.f32 20.0, %v1121_v3 }
  0x33   :  { %v1193_v15 = vpop.eup %1192  ;;  %362 = vadd.xlane.f32.xlu1 %v361_v7  ;;  %v358_v16 = vadd.f32 %v1191_v12, %v1189_v5  ;;  %v577_v17 = vadd.f32 %v1179_v41, %v576_v6  ;;  %v262_v18 = vmul.f32 1.442695, %v176_v10  ;;  %v1122_v19 = vadd.f32 -1.0, %v1509_v4 }
  0x34   :  { %v1195_v20 = vpop.eup %1194  ;;  %v541_v21 = vadd.f32 %v1189_v5, %v540_v13  ;;  %1210 = vpow2.f32 %v260_v62  ;;  %v264_v22 = vmul.f32 1.442695, %v177_v14  ;;  %v1123_v23 = vadd.f32 -1.0, %v51_v11  ;;  %v1537_v62 = vld [vmem:[#allocation2 + $0xf0] sm:$0xff] }
  0x35   :  { %v1197_v25 = vpop.eup %1196  ;;  %v578_v27 = vadd.f32 %v1191_v12, %v577_v17  ;;  %359 = vadd.xlane.f32.xlu0 %v358_v16  ;;  %v367_v28 = vadd.f32 %v1195_v20, %v1193_v15  ;;  %v1518_v29 = vadd.s32 56, %v1466_v1  ;;  %v178_v30 = vmul.f32 20.0, %v1122_v19 }
  0x36   :  { %v1199_v35 = vpop.eup %1198  ;;  %v542_v36 = vadd.f32 %v1185_v55, %v541_v21  ;;  %v812_v37 = vsel %vm748_vm4, %v1481_v32, 0.0  ;;  %1212 = vpow2.f32 %v262_v18  ;;  %v179_v38 = vmul.f32 20.0, %v1123_v23 }
  0x37   :  { %v1201_v39 = vpop.eup %1200  ;;  %368 = vadd.xlane.f32.xlu1 %v367_v28  ;;  %v364_v41 = vadd.f32 %v1199_v35, %v1197_v25  ;;  %v579_v43 = vadd.f32 %v1187_v60, %v578_v27  ;;  %1214 = vpow2.f32 %v264_v22  ;;  %v266_v45 = vmul.f32 1.442695, %v178_v30  ;;  %v58_v27 = vld [vmem:[#allocation2 + $0x100] sm:$0xff] }
  0x38   :  { %v1203_v46 = vpop.eup %1202  ;;  %v543_v47 = vadd.f32 %v1197_v25, %v542_v36  ;;  %v268_v48 = vmul.f32 1.442695, %v179_v38  ;;  %v1124_v49 = vadd.f32 -1.0, %v1520_v31  ;;  %v1125_v50 = vadd.f32 -1.0, %v53_v34  ;;  %v1550_v36 = vld [vmem:[#allocation2 + $0x108] sm:$0xff] }
  0x39   :  { %v1205_v52 = vpop.eup %1204  ;;  %v580_v53 = vadd.f32 %v1199_v35, %v579_v43  ;;  %365 = vadd.xlane.f32.xlu0 %v364_v41  ;;  %v370_v32 = vadd.f32 %v1203_v46, %v1201_v39  ;;  %vm750_vm5 = vcmp.eq.s32.totalorder %v1506_v42, %v1469_v2  ;;  %1216 = vpow2.f32 %v266_v45 }
  0x3a   :  { %v1207_v33 = vpop.eup %1206  ;;  %v544_v54 = vadd.f32 %v1193_v15, %v543_v47  ;;  %1218 = vpow2.f32 %v268_v48  ;;  %v180_v55 = vmul.f32 20.0, %v1124_v49  ;;  %v181_v56 = vmul.f32 20.0, %v1125_v50  ;;  %v57_v15 = vld [vmem:[#allocation2 + $0xf8] sm:$0xff]  ;;  %v60_v50 = vld [vmem:[#allocation2 + $0x110] sm:$0xff] }
  0x3b   :  { %881 = vadd.xlane.f32.xlu1 %v812_v37  ;;  %v581_v59 = vadd.f32 %v1195_v20, %v580_v53  ;;  %vm752_vm6 = vcmp.eq.s32.totalorder %v1512_v8, %v1469_v2  ;;  %v1534_v60 = vadd.s32 64, %v1466_v1  ;;  %v1126_v61 = vadd.f32 -1.0, %v1527_v51 }
  0x3c   :  { %v1209_v3 = vpop.eup %1208  ;;  %v545_v5 = vadd.f32 %v1201_v39, %v544_v54  ;;  %v814_v6 = vsel %vm750_vm5, %v1479_v26, 0.0  ;;  %v270_v7 = vmul.f32 1.442695, %v180_v55  ;;  %v272_v10 = vmul.f32 1.442695, %v181_v56 }
  0x3d   :  { %v582_v11 = vadd.f32 %v1203_v46, %v581_v59  ;;  %371 = vadd.xlane.f32.xlu0 %v370_v32  ;;  %v373_v12 = vadd.f32 %v1207_v33, %v1205_v52  ;;  %v1127_v13 = vadd.f32 -1.0, %v55_v57  ;;  %v182_v14 = vmul.f32 20.0, %v1126_v61 }
  0x3e   :  { %v1211_v16 = vpop.eup %1210  ;;  %v546_v17 = vadd.f32 %v1205_v52, %v545_v5  ;;  %vm754_vm7 = vcmp.eq.s32.totalorder %v1518_v29, %v1469_v2  ;;  %1220 = vpow2.f32 %v270_v7  ;;  %v1128_v18 = vadd.f32 -1.0, %v1537_v62  ;;  %v1558_v52 = vld [vmem:[#allocation2 + $0x118] sm:$0xff] }
  0x3f   :  { %884 = vadd.xlane.f32.xlu1 %v814_v6  ;;  %v583_v19 = vadd.f32 %v1207_v33, %v582_v11  ;;  %1222 = vpow2.f32 %v272_v10  ;;  %v183_v26 = vmul.f32 20.0, %v1127_v13  ;;  %v274_v42 = vmul.f32 1.442695, %v182_v14  ;;  %v1562_v33 = vld [vmem:[#allocation2 + $0x128] sm:$0xff] }
  0x40   :  { %v1213_v20 = vpop.eup %1212  ;;  %v816_v21 = vsel %vm752_vm6, %v1488_v58, 0.0  ;;  %v547_v22 = vadd.f32 %v1209_v3, %v546_v17  ;;  %v1129_v23 = vadd.f32 -1.0, %v57_v15  ;;  %v184_v25 = vmul.f32 20.0, %v1128_v18 }
  0x41   :  { %v1215_v28 = vpop.eup %1214  ;;  %374 = vadd.xlane.f32.xlu0 %v373_v12  ;;  %v376_v30 = vadd.f32 %v1211_v16, %v1209_v3  ;;  %v584_v34 = vadd.f32 %v1211_v16, %v583_v19  ;;  %1224 = vpow2.f32 %v274_v42  ;;  %v276_v35 = vmul.f32 1.442695, %v183_v26  ;;  %v64_v16 = vld [vmem:[#allocation2 + $0x130] sm:$0xff] }
  0x42   :  { %v548_v37 = vadd.f32 %v1213_v20, %v547_v22  ;;  %v714_v38 = vadd.s32 72, %v1466_v1  ;;  %v185_v39 = vmul.f32 20.0, %v1129_v23  ;;  %v278_v41 = vmul.f32 1.442695, %v184_v25  ;;  %v1574_v22 = vld [vmem:[#allocation2 + $0x138] sm:$0xff] }
  0x43   :  { %v1217_v43 = vpop.eup %1216  ;;  %887 = vadd.xlane.f32.xlu1 %v816_v21  ;;  %v818_v58 = vsel %vm754_vm7, %v1483_v44, 0.0  ;;  %v585_v8 = vadd.f32 %v1215_v28, %v584_v34  ;;  %1226 = vpow2.f32 %v276_v35  ;;  %v1130_v45 = vadd.f32 -1.0, %v58_v27  ;;  %v62_v44 = vld [vmem:[#allocation2 + $0x120] sm:$0xff] }
  0x44   :  { %v1219_v46 = vpop.eup %1218  ;;  %v549_v47 = vadd.f32 %v1217_v43, %v548_v37  ;;  %1228 = vpow2.f32 %v278_v41  ;;  %v280_v48 = vmul.f32 1.442695, %v185_v39  ;;  %v1131_v49 = vadd.f32 -1.0, %v1550_v36  ;;  %v66_v35 = vld [vmem:[#allocation2 + $0x140] sm:$0xff]  ;;  %v1578_v39 = vld [vmem:[#allocation2 + $0x148] sm:$0xff] }
  0x45   :  { %377 = vadd.xlane.f32.xlu0 %v376_v30  ;;  %v379_v53 = vadd.f32 %v1215_v28, %v1213_v20  ;;  %vm756_vm8 = vcmp.eq.s32.totalorder %v1534_v60, %v1469_v2  ;;  %v586_v32 = vadd.f32 %v1219_v46, %v585_v8  ;;  %v186_v29 = vmul.f32 20.0, %v1130_v45  ;;  %v68_v8 = vld [vmem:[#allocation2 + $0x150] sm:$0xff] }
  0x46   :  { %vm758_vm9 = vcmp.eq.s32.totalorder %v714_v38, %v1469_v2  ;;  %1230 = vpow2.f32 %v280_v48  ;;  %v187_v54 = vmul.f32 20.0, %v1131_v49  ;;  %v715_v55 = vadd.s32 80, %v1466_v1 }
  0x47   :  { %890 = vadd.xlane.f32.xlu1 %v818_v58  ;;  %v282_v56 = vmul.f32 1.442695, %v186_v29  ;;  %v1132_v57 = vadd.f32 -1.0, %v60_v50  ;;  %v1133_v59 = vadd.f32 -1.0, %v1558_v52  ;;  %v820_v3 = vsel %vm756_vm8, %v1490_v63, 0.0  ;;  %v1587_v29 = vld [vmem:[#allocation2 + $0x158] sm:$0xff] }
  0x48   :  { %v1221_v61 = vpop.eup %1220  ;;  %v284_v60 = vmul.f32 1.442695, %v187_v54  ;;  %v1134_v5 = vadd.f32 -1.0, %v62_v44  ;;  %v1135_v6 = vadd.f32 -1.0, %v1562_v33  ;;  %v382_v10 = vadd.f32 %v1219_v46, %v1217_v43 }
  0x49   :  { %v1223_v7 = vpop.eup %1222  ;;  %380 = vadd.xlane.f32.xlu0 %v379_v53  ;;  %v550_v11 = vadd.f32 %v1221_v61, %v549_v47  ;;  %1232 = vpow2.f32 %v282_v56  ;;  %v188_v12 = vmul.f32 20.0, %v1132_v57  ;;  %v822_v13 = vsel %vm758_vm9, %v1493_v9, 0.0 }
  0x4a   :  { %v587_v14 = vadd.f32 %v1223_v7, %v586_v32  ;;  %1234 = vpow2.f32 %v284_v60  ;;  %v189_v15 = vmul.f32 20.0, %v1133_v59  ;;  %vm760_vm10 = vcmp.eq.s32.totalorder %v715_v55, %v1469_v2 }
  0x4b   :  { %v1225_v17 = vpop.eup %1224  ;;  %893 = vadd.xlane.f32.xlu1 %v820_v3  ;;  %v286_v63 = vmul.f32 1.442695, %v188_v12  ;;  %v190_v18 = vmul.f32 20.0, %v1134_v5  ;;  %v191_v19 = vmul.f32 20.0, %v1135_v6  ;;  %v385_v26 = vadd.f32 %v1223_v7, %v1221_v61  ;;  %v70_v61 = vld [vmem:[#allocation2 + $0x160] sm:$0xff]  ;;  %v1595_v6 = vld [vmem:[#allocation2 + $0x168] sm:$0xff] }
  0x4c   :  { %v551_v42 = vadd.f32 %v1225_v17, %v550_v11  ;;  %v716_v20 = vadd.s32 88, %v1466_v1  ;;  %v288_v21 = vmul.f32 1.442695, %v189_v15  ;;  %v1136_v27 = vadd.f32 -1.0, %v64_v16 }
  0x4d   :  { %v1227_v23 = vpop.eup %1226  ;;  %383 = vadd.xlane.f32.xlu0 %v382_v10  ;;  %1236 = vpow2.f32 %v286_v63  ;;  %v290_v9 = vmul.f32 1.442695, %v190_v18  ;;  %v292_v25 = vmul.f32 1.442695, %v191_v19  ;;  %v717_v34 = vadd.s32 96, %v1466_v1 }
  0x4e   :  { %v1229_v28 = vpop.eup %1228  ;;  %v588_v30 = vadd.f32 %v1227_v23, %v587_v14  ;;  %1238 = vpow2.f32 %v288_v21  ;;  %v1137_v38 = vadd.f32 -1.0, %v1574_v22  ;;  %v824_v43 = vsel %vm760_vm10, %v1497_v24, 0.0 }
  0x4f   :  { %896 = vadd.xlane.f32.xlu1 %v822_v13  ;;  %v552_v37 = vadd.f32 %v1229_v28, %v551_v42  ;;  %1240 = vpow2.f32 %v290_v9  ;;  %vm762_vm11 = vcmp.eq.s32.totalorder %v716_v20, %v1469_v2  ;;  %v192_v58 = vmul.f32 20.0, %v1136_v27  ;;  %v72_v42 = vld [vmem:[#allocation2 + $0x170] sm:$0xff]  ;;  %v1604_v20 = vld [vmem:[#allocation2 + $0x178] sm:$0xff] }
  0x50   :  { %v1231_v41 = vpop.eup %1230  ;;  %1242 = vpow2.f32 %v292_v25  ;;  %v388_v45 = vadd.f32 %v1227_v23, %v1225_v17  ;;  %v193_v47 = vmul.f32 20.0, %v1137_v38  ;;  %v1138_v48 = vadd.f32 -1.0, %v66_v35 }
  0x51   :  { %386 = vadd.xlane.f32.xlu0 %v385_v26  ;;  %v589_v46 = vadd.f32 %v1231_v41, %v588_v30  ;;  %vm764_vm12 = vcmp.eq.s32.totalorder %v717_v34, %v1469_v2  ;;  %v718_v49 = vadd.s32 104, %v1466_v1  ;;  %v1139_v50 = vadd.f32 -1.0, %v1578_v39 }
  0x52   :  { %v294_v32 = vmul.f32 1.442695, %v192_v58  ;;  %v194_v24 = vmul.f32 20.0, %v1138_v48  ;;  %v1140_v44 = vadd.f32 -1.0, %v68_v8  ;;  %v826_v55 = vsel %vm762_vm11, %v1503_v40, 0.0 }
  0x53   :  { %v1233_v53 = vpop.eup %1232  ;;  %899 = vadd.xlane.f32.xlu1 %v824_v43  ;;  %v296_v57 = vmul.f32 1.442695, %v193_v47  ;;  %v195_v59 = vmul.f32 20.0, %v1139_v50  ;;  %v391_v3 = vadd.f32 %v1231_v41, %v1229_v28  ;;  %v828_v60 = vsel %vm764_vm12, %v1509_v4, 0.0  ;;  %v1613_v41 = vld [vmem:[#allocation2 + $0x188] sm:$0xff] }
  0x54   :  { %v1235_v54 = vpop.eup %1234  ;;  %v553_v56 = vadd.f32 %v1233_v53, %v552_v37  ;;  %vm766_vm13 = vcmp.eq.s32.totalorder %v718_v49, %v1469_v2  ;;  %v719_v7 = vadd.s32 112, %v1466_v1  ;;  %v298_v10 = vmul.f32 1.442695, %v194_v24  ;;  %v74_v37 = vld [vmem:[#allocation2 + $0x180] sm:$0xff]  ;;  %v1626_v24 = vld [vmem:[#allocation2 + $0x198] sm:$0xff] }
  0x55   :  { %389 = vadd.xlane.f32.xlu0 %v388_v45  ;;  %v590_v5 = vadd.f32 %v1235_v54, %v589_v46  ;;  %v1141_v40 = vadd.f32 -1.0, %v1587_v29  ;;  %1244 = vpow2.f32 %v294_v32  ;;  %v300_v12 = vmul.f32 1.442695, %v195_v59 }
  0x56   :  { %v196_v13 = vmul.f32 20.0, %v1140_v44  ;;  %v1142_v14 = vadd.f32 -1.0, %v70_v61  ;;  %1246 = vpow2.f32 %v296_v57  ;;  %v1143_v17 = vadd.f32 -1.0, %v1595_v6 }
  0x57   :  { %v1237_v11 = vpop.eup %1236  ;;  %902 = vadd.xlane.f32.xlu1 %v826_v55  ;;  %v197_v4 = vmul.f32 20.0, %v1141_v40  ;;  %v394_v18 = vadd.f32 %v1235_v54, %v1233_v53  ;;  %v830_v19 = vsel %vm766_vm13, %v1520_v31, 0.0  ;;  %vm768_vm14 = vcmp.eq.s32.totalorder %v719_v7, %v1469_v2  ;;  %v76_v53 = vld [vmem:[#allocation2 + $0x190] sm:$0xff]  ;;  %v78_v7 = vld [vmem:[#allocation2 + $0x1a0] sm:$0xff] }
  0x58   :  { %v1239_v15 = vpop.eup %1238  ;;  %v554_v16 = vadd.f32 %v1237_v11, %v553_v56  ;;  %v720_v9 = vadd.s32 120, %v1466_v1  ;;  %1248 = vpow2.f32 %v298_v10  ;;  %v302_v27 = vmul.f32 1.442695, %v196_v13 }
  0x59   :  { %v1241_v63 = vpop.eup %1240  ;;  %392 = vadd.xlane.f32.xlu0 %v391_v3  ;;  %v591_v26 = vadd.f32 %v1239_v15, %v590_v5  ;;  %1250 = vpow2.f32 %v300_v12  ;;  %v198_v28 = vmul.f32 20.0, %v1142_v14  ;;  %v304_v30 = vmul.f32 1.442695, %v197_v4 }
  0x5a   :  { %v1243_v21 = vpop.eup %1242  ;;  %v1607_v23 = vadd.f32 %v1241_v63, %v554_v16  ;;  %v199_v31 = vmul.f32 20.0, %v1143_v17  ;;  %v1144_v34 = vadd.f32 -1.0, %v72_v42  ;;  %v1145_v35 = vadd.f32 -1.0, %v1604_v20  ;;  %v80_v17 = vld [vmem:[#allocation2 + $0x1b0] sm:$0xff] }
  0x5b   :  { %905 = vadd.xlane.f32.xlu1 %v828_v60  ;;  %v1610_v25 = vadd.f32 %v1243_v21, %v591_v26  ;;  %v397_v38 = vadd.f32 %v1239_v15, %v1237_v11  ;;  %v832_v43 = vsel %vm768_vm14, %v1527_v51, 0.0  ;;  %vm770_vm15 = vcmp.eq.s32.totalorder %v720_v9, %v1469_v2 }
  0x5c   :  { %v721_v58 = vadd.s32 128, %v1466_v1  ;;  %v1621_v8 = vadd.s32 128, %v1469_v2  ;;  %1252 = vpow2.f32 %v302_v27  ;;  %v306_v45 = vmul.f32 1.442695, %v198_v28 }
  0x5d   :  { %395 = vadd.xlane.f32.xlu0 %v394_v18  ;;  %v200_v46 = vmul.f32 20.0, %v1144_v34  ;;  %v1146_v47 = vadd.f32 -1.0, %v74_v37  ;;  %1254 = vpow2.f32 %v304_v30  ;;  %v308_v48 = vmul.f32 1.442695, %v199_v31  ;;  %v1654_v18 = vld [vmem:[#allocation2 + $0x1b8] sm:$0xff]  ;;  %v82_v34 = vld [vmem:[#allocation2 + $0x1c0] sm:$0xff] }
  0x5e   :  { %v201_v49 = vmul.f32 20.0, %v1145_v35  ;;  %v1147_v50 = vadd.f32 -1.0, %v1613_v41  ;;  %v400_v51 = vadd.f32 %v1243_v21, %v1241_v63  ;;  %v834_v54 = vsel %vm770_vm15, %v1537_v62, 0.0  ;;  %v1642_v62 = vld [vmem:[#allocation2 + $0x1a8] sm:$0xff] }
  0x5f   :  { %908 = vadd.xlane.f32.xlu1 %v830_v19  ;;  %v1624_v32 = vpop.eup %1244  ;;  %vm773_vm0 = vcmp.eq.s32.totalorder %v721_v58, %v1621_v8  ;;  %v722_v55 = vadd.s32 136, %v1466_v1  ;;  %1256 = vpow2.f32 %v306_v45  ;;  %v310_v56 = vmul.f32 1.442695, %v200_v46  ;;  %v1668_v37 = vld [vmem:[#allocation2 + $0x1c8] sm:$0xff] }
  0x60   :  { %v1628_v44 = vpop.eup %1246  ;;  %v202_v57 = vmul.f32 20.0, %v1146_v47  ;;  %v1148_v59 = vadd.f32 -1.0, %v76_v53  ;;  %1258 = vpow2.f32 %v308_v48  ;;  %v312_v3 = vmul.f32 1.442695, %v201_v49  ;;  %v84_v53 = vld [vmem:[#allocation2 + $0x1d0] sm:$0xff] }
  0x61   :  { %398 = vadd.xlane.f32.xlu0 %v397_v38  ;;  %v203_v60 = vmul.f32 20.0, %v1147_v50  ;;  %v1149_v5 = vadd.f32 -1.0, %v1626_v24  ;;  %v403_v2 = vadd.f32 %v1628_v44, %v1624_v32  ;;  %v837_v40 = vsel %vm773_vm0, %v1550_v36, 0.0 }
  0x62   :  { %v1635_v61 = vpop.eup %1248  ;;  %vm775_vm1 = vcmp.eq.s32.totalorder %v722_v55, %v1621_v8  ;;  %v723_v11 = vadd.s32 144, %v1466_v1  ;;  %1260 = vpow2.f32 %v310_v56  ;;  %v314_v12 = vmul.f32 1.442695, %v202_v57 }
  0x63   :  { %911 = vadd.xlane.f32.xlu1 %v832_v43  ;;  %v1638_v10 = vpop.eup %1250  ;;  %v204_v13 = vmul.f32 20.0, %v1148_v59  ;;  %v1150_v14 = vadd.f32 -1.0, %v78_v7  ;;  %1262 = vpow2.f32 %v312_v3  ;;  %v316_v15 = vmul.f32 1.442695, %v203_v60 }
  0x64   :  { %v205_v16 = vmul.f32 20.0, %v1149_v5  ;;  %v1151_v4 = vadd.f32 -1.0, %v1642_v62  ;;  %v406_v36 = vadd.f32 %v1638_v10, %v1635_v61  ;;  %v839_v26 = vsel %vm775_vm1, %v1558_v52, 0.0 }
  0x65   :  { %401 = vadd.xlane.f32.xlu0 %v400_v51  ;;  %vm777_vm2 = vcmp.eq.s32.totalorder %v723_v11, %v1621_v8  ;;  %v724_v42 = vadd.s32 152, %v1466_v1  ;;  %1264 = vpow2.f32 %v314_v12  ;;  %v318_v21 = vmul.f32 1.442695, %v204_v13  ;;  %v1696_v12 = vld [vmem:[#allocation2 + $0x1e8] sm:$0xff] }
  0x66   :  { %v1650_v63 = vpop.eup %1252  ;;  %v206_v9 = vmul.f32 20.0, %v1150_v14  ;;  %v1152_v27 = vadd.f32 -1.0, %v80_v17  ;;  %1266 = vpow2.f32 %v316_v15  ;;  %v320_v28 = vmul.f32 1.442695, %v205_v16 }
  0x67   :  { %914 = vadd.xlane.f32.xlu1 %v834_v54  ;;  %v1656_v19 = vpop.eup %1254  ;;  %v207_v30 = vmul.f32 20.0, %v1151_v4  ;;  %v1153_v31 = vadd.f32 -1.0, %v1654_v18  ;;  %v841_v43 = vsel %vm777_vm2, %v1562_v33, 0.0  ;;  %vm779_vm3 = vcmp.eq.s32.totalorder %v724_v42, %v1621_v8  ;;  %v1682_v54 = vld [vmem:[#allocation2 + $0x1d8] sm:$0xff]  ;;  %v88_v42 = vld [vmem:[#allocation2 + $0x1f0] sm:$0xff] }
  0x68   :  { %v409_v52 = vadd.f32 %v1656_v19, %v1650_v63  ;;  %v725_v58 = vadd.s32 160, %v1466_v1  ;;  %1268 = vpow2.f32 %v318_v21  ;;  %v322_v45 = vmul.f32 1.442695, %v206_v9 }
  0x69   :  { %404 = vadd.xlane.f32.xlu0 %v403_v2  ;;  %v1664_v35 = vpop.eup %1256  ;;  %v208_v46 = vmul.f32 20.0, %v1152_v27  ;;  %v1154_v47 = vadd.f32 -1.0, %v82_v34  ;;  %1270 = vpow2.f32 %v320_v28  ;;  %v324_v48 = vmul.f32 1.442695, %v207_v30  ;;  %v1710_v27 = vld [vmem:[#allocation2 + $0x1f8] sm:$0xff] }
  0x6a   :  { %v1670_v38 = vpop.eup %1258  ;;  %v209_v49 = vmul.f32 20.0, %v1153_v31  ;;  %v1155_v50 = vadd.f32 -1.0, %v1668_v37  ;;  %v843_v56 = vsel %vm779_vm3, %v1574_v22, 0.0  ;;  %vm781_vm4 = vcmp.eq.s32.totalorder %v725_v58, %v1621_v8 }
  0x6b   :  { %917 = vadd.xlane.f32.xlu1 %v837_v40  ;;  %v412_v33 = vadd.f32 %v1670_v38, %v1664_v35  ;;  %v726_v57 = vadd.s32 168, %v1466_v1  ;;  %1272 = vpow2.f32 %v322_v45  ;;  %v326_v59 = vmul.f32 1.442695, %v208_v46  ;;  %v86_v40 = vld [vmem:[#allocation2 + $0x1e0] sm:$0xff] }
  0x6c   :  { %v1678_v51 = vpop.eup %1260  ;;  %v210_v3 = vmul.f32 20.0, %v1154_v47  ;;  %v1156_v60 = vadd.f32 -1.0, %v84_v53  ;;  %1274 = vpow2.f32 %v324_v48  ;;  %v328_v5 = vmul.f32 1.442695, %v209_v49 }
  0x6d   :  { %407 = vadd.xlane.f32.xlu0 %v406_v36  ;;  %v1684_v55 = vpop.eup %1262  ;;  %v211_v7 = vmul.f32 20.0, %v1155_v50  ;;  %v1157_v2 = vadd.f32 -1.0, %v1682_v54  ;;  %v845_v14 = vsel %vm781_vm4, %v1578_v39, 0.0  ;;  %vm783_vm5 = vcmp.eq.s32.totalorder %v726_v57, %v1621_v8 }
  0x6e   :  { %v415_v22 = vadd.f32 %v1684_v55, %v1678_v51  ;;  %1276 = vpow2.f32 %v326_v59  ;;  %v330_v15 = vmul.f32 1.442695, %v210_v3  ;;  %v212_v16 = vmul.f32 20.0, %v1156_v60 }
  0x6f   :  { %920 = vadd.xlane.f32.xlu1 %v839_v26  ;;  %v1692_v11 = vpop.eup %1264  ;;  %v1158_v4 = vadd.f32 -1.0, %v86_v40  ;;  %1278 = vpow2.f32 %v328_v5  ;;  %v332_v17 = vmul.f32 1.442695, %v211_v7  ;;  %v213_v36 = vmul.f32 20.0, %v1157_v2 }
  0x70   :  { %v1698_v13 = vpop.eup %1266  ;;  %v1159_v26 = vadd.f32 -1.0, %v1696_v12  ;;  %v727_v39 = vadd.s32 176, %v1466_v1  ;;  %v847_v30 = vsel %vm783_vm5, %v1587_v29, 0.0  ;;  %1280 = vpow2.f32 %v330_v15 }
  0x71   :  { %410 = vadd.xlane.f32.xlu0 %v409_v52  ;;  %v418_v9 = vadd.f32 %v1698_v13, %v1692_v11  ;;  %v334_v31 = vmul.f32 1.442695, %v212_v16  ;;  %v214_v34 = vmul.f32 20.0, %v1158_v4  ;;  %v1160_v52 = vadd.f32 -1.0, %v88_v42 }
  0x72   :  { %v1705_v21 = vpop.eup %1268  ;;  %1282 = vpow2.f32 %v332_v17  ;;  %v215_v58 = vmul.f32 20.0, %v1159_v26  ;;  %v1161_v45 = vadd.f32 -1.0, %v1710_v27  ;;  %vm785_vm6 = vcmp.eq.s32.totalorder %v727_v39, %v1621_v8 }
  0x73   :  { %923 = vadd.xlane.f32.xlu1 %v841_v43  ;;  %v1712_v28 = vpop.eup %1270  ;;  %v336_v43 = vmul.f32 1.442695, %v213_v36  ;;  %v728_v29 = vadd.s32 184, %v1466_v1  ;;  %1284 = vpow2.f32 %v334_v31  ;;  %v338_v49 = vmul.f32 1.442695, %v214_v34 }
  0x74   :  { %v421_v47 = vadd.f32 %v1712_v28, %v1705_v21  ;;  %v216_v50 = vmul.f32 20.0, %v1160_v52  ;;  %v849_v53 = vsel %vm785_vm6, %v1595_v6, 0.0  ;;  %v729_v3 = vadd.s32 192, %v1466_v1 }
  0x75   :  { %413 = vadd.xlane.f32.xlu0 %v412_v33  ;;  %v1718_v46 = vpop.eup %1272  ;;  %1286 = vpow2.f32 %v336_v43  ;;  %v340_v33 = vmul.f32 1.442695, %v215_v58  ;;  %vm787_vm7 = vcmp.eq.s32.totalorder %v728_v29, %v1621_v8  ;;  %v556_v15 = vadd.f32 %v1624_v32, %v1607_v23 }
  0x76   :  { %v1724_v48 = vpop.eup %1274  ;;  %1288 = vpow2.f32 %v338_v49  ;;  %v342_v5 = vmul.f32 1.442695, %v216_v50  ;;  %v851_v6 = vsel %vm787_vm7, %v1604_v20, 0.0  ;;  %vm789_vm8 = vcmp.eq.s32.totalorder %v729_v3, %v1621_v8 }
  0x77   :  { %926 = vadd.xlane.f32.xlu1 %v843_v56  ;;  %v217_v56 = vmul.f32 20.0, %v1161_v45  ;;  %v424_v59 = vadd.f32 %v1724_v48, %v1718_v46  ;;  %1290 = vpow2.f32 %v340_v33  ;;  %v593_v20 = vadd.f32 %v1628_v44, %v1610_v25 }
  0x78   :  { %v1727_v57 = vpop.eup %1276  ;;  %1292 = vpow2.f32 %v342_v5  ;;  %v853_v16 = vsel %vm789_vm8, %v1613_v41, 0.0  ;;  %v732_v36 = vadd.s32 216, %v1466_v1  ;;  %v557_v23 = vadd.f32 %v1635_v61, %v556_v15 }
  0x79   :  { %416 = vadd.xlane.f32.xlu0 %v415_v22  ;;  %v1733_v60 = vpop.eup %1278  ;;  %v344_v7 = vmul.f32 1.442695, %v217_v56  ;;  %v730_v22 = vadd.s32 200, %v1466_v1  ;;  %v594_v25 = vadd.f32 %v1638_v10, %v593_v20  ;;  %v734_v42 = vadd.s32 232, %v1466_v1 }
  0x7a   :  { %v1736_v2 = vpop.eup %1280  ;;  %v427_v40 = vadd.f32 %v1733_v60, %v1727_v57  ;;  %vm795_vm10 = vcmp.eq.s32.totalorder %v732_v36, %v1621_v8  ;;  %v558_v39 = vadd.f32 %v1650_v63, %v557_v23  ;;  %v731_v63 = vadd.s32 208, %v1466_v1 }
  0x7b   :  { %929 = vadd.xlane.f32.xlu1 %v845_v14  ;;  %1294 = vpow2.f32 %v344_v7  ;;  %vm791_vm9 = vcmp.eq.s32.totalorder %v730_v22, %v1621_v8  ;;  %v859_v61 = vsel %vm795_vm10, %v1654_v18, 0.0  ;;  %vm799_vm11 = vcmp.eq.s32.totalorder %v734_v42, %v1621_v8 }
  0x7c   :  { %v1742_v14 = vpop.eup %1282  ;;  %v855_v32 = vsel %vm791_vm9, %v1626_v24, 0.0  ;;  %v736_v24 = vadd.s32 248, %v1466_v1  ;;  %v559_v52 = vadd.f32 %v1664_v35, %v558_v39  ;;  %vm793_vm13 = vcmp.eq.s32.totalorder %v731_v63, %v1621_v8 }
  0x7d   :  { %419 = vadd.xlane.f32.xlu0 %v418_v9  ;;  %v1749_v4 = vpop.eup %1284  ;;  %v430_v17 = vadd.f32 %v1742_v14, %v1736_v2  ;;  %v733_v35 = vadd.s32 224, %v1466_v1  ;;  %v1435_v36 = vmov 1966171168   ;;  %vm632_vm0 = vcmp.lt.s32.totalorder %v618_v0, 256 }
  0x7e   :  { %vm803_vm12 = vcmp.eq.s32.totalorder %v736_v24, %v1621_v8  ;;  %v560_v18 = vadd.f32 %v1678_v51, %v559_v52  ;;  %v735_v51 = vadd.s32 240, %v1466_v1 }
  0x7f   :  { %932 = vadd.xlane.f32.xlu1 %v847_v30  ;;  %v1287_v26 = vpop.eup %1286  ;;  %v595_v30 = vadd.f32 %v1656_v19, %v594_v25  ;;  %v863_v19 = vsel %vm799_vm11, %v1682_v54, 0.0  ;;  %vm797_vm14 = vcmp.eq.s32.totalorder %v733_v35, %v1621_v8 }
  0x80   :  { %v1289_v41 = vpop.eup %1288  ;;  %v433_v44 = vadd.f32 %v1287_v26, %v1749_v4  ;;  %v561_v54 = vadd.f32 %v1692_v11, %v560_v18  ;;  %vm801_vm15 = vcmp.eq.s32.totalorder %v735_v51, %v1621_v8 }
  0x81   :  { %422 = vadd.xlane.f32.xlu0 %v421_v47  ;;  %v1291_v9 = vpop.eup %1290  ;;  %v596_v43 = vadd.f32 %v1670_v38, %v595_v30  ;;  %v867_v38 = vsel %vm803_vm12, %v1710_v27, 0.0  ;;  %v857_v47 = vsel %vm793_vm13, %v1642_v62, 0.0  ;;  %v865_v62 = vsel %vm801_vm15, %v1696_v12, 0.0 }
  0x82   :  { %v1293_v10 = vpop.eup %1292  ;;  %v436_v31 = vadd.f32 %v1291_v9, %v1289_v41  ;;  %v562_v49 = vadd.f32 %v1705_v21, %v561_v54 }
  0x83   :  { %935 = vadd.xlane.f32.xlu1 %v849_v53  ;;  %v597_v45 = vadd.f32 %v1684_v55, %v596_v43  ;;  %v861_v55 = vsel %vm797_vm14, %v1668_v37, 0.0 }
  0x84   :  { %v563_v11 = vadd.f32 %v1718_v46, %v562_v49 }
  0x85   :  { %425 = vadd.xlane.f32.xlu0 %v424_v59  ;;  %v1295_v34 = vpop.eup %1294  ;;  %v598_v29 = vadd.f32 %v1698_v13, %v597_v45 }
  0x86   :  { %v439_v58 = vadd.f32 %v1295_v34, %v1293_v10  ;;  %v564_v53 = vadd.f32 %v1727_v57, %v563_v11 }
  0x87   :  { %938 = vadd.xlane.f32.xlu1 %v851_v6  ;;  %v599_v50 = vadd.f32 %v1712_v28, %v598_v29 }
  0x88   :  { %v565_v21 = vadd.f32 %v1736_v2, %v564_v53 }
  0x89   :  { %428 = vadd.xlane.f32.xlu0 %v427_v40  ;;  %v600_v13 = vadd.f32 %v1724_v48, %v599_v50 }
  0x8a   :  { %v566_v8 = vadd.f32 %v1749_v4, %v565_v21 }
  0x8b   :  { %941 = vadd.xlane.f32.xlu1 %v853_v16  ;;  %v601_v37 = vadd.f32 %v1733_v60, %v600_v13 }
  0x8c   :  { %v567_v56 = vadd.f32 %v1289_v41, %v566_v8 }
  0x8d   :  { %431 = vadd.xlane.f32.xlu0 %v430_v17  ;;  %v602_v28 = vadd.f32 %v1742_v14, %v601_v37 }
  0x8e   :  { %v568_v48 = vadd.f32 %v1293_v10, %v567_v56 }
  0x8f   :  { %944 = vadd.xlane.f32.xlu1 %v855_v32  ;;  %v603_v12 = vadd.f32 %v1287_v26, %v602_v28  ;;  %v616_v26 = vunpack.c.l.s4 %v1435_v36 }
  0x90   :  { %v569_v6 = vrot.slane %v568_v48, 4 }
  0x91   :  { %434 = vadd.xlane.f32.xlu0 %v433_v44  ;;  %v604_v46 = vadd.f32 %v1291_v9, %v603_v12  ;;  %v617_v41 = vunpack.c.0.s8 %v616_v26 }
  0x92   :  { %v570_v7 = vadd.f32 %v569_v6, %v568_v48 }
  0x93   :  { %950 = vadd.xlane.f32.xlu1 %v859_v61  ;;  %v605_v3 = vadd.f32 %v1295_v34, %v604_v46  ;;  %v620_v9 = vsub.s32 %v617_v41, %v1466_v1 }
  0x94   :  { %v571_v2 = vrot.slane %v570_v7, 2 }
  0x95   :  { %437 = vadd.xlane.f32.xlu0 %v436_v31  ;;  %v606_v57 = vrot.slane %v605_v3, 4 }
  0x96   :  { %v572_v15 = vadd.f32 %v571_v2, %v570_v7 }
  0x97   :  { %956 = vadd.xlane.f32.xlu1 %v863_v19  ;;  %v607_v60 = vadd.f32 %v606_v57, %v605_v3 }
  0x98   :  { %v573_v4 = vrot.slane %v572_v15, 1 }
  0x99   :  { %440 = vadd.xlane.f32.xlu0 %v439_v58  ;;  %v608_v22 = vrot.slane %v607_v60, 2 }
  0x9a   :  { %v574_v25 = vadd.f32 %v573_v4, %v572_v15 }
  0x9b   :  { %962 = vadd.xlane.f32.xlu1 %v867_v38  ;;  %v609_v20 = vadd.f32 %v608_v22, %v607_v60 }
  0x9d   :  { %947 = vadd.xlane.f32.xlu0 %v857_v47  ;;  %v610_v17 = vrot.slane %v609_v20, 1 }
  0x9f   :  { %v611_v32 = vadd.f32 %v610_v17, %v609_v20 }
  0xa1   :  { %953 = vadd.xlane.f32.xlu0 %v861_v55  ;;  %v614_v42 = vcombine.low %v574_v25, %v611_v32 }
  0xa3   :  { %v621_v30 = vrot.slane %v614_v42, %v620_v9 }
  0xa5   :  { %959 = vadd.xlane.f32.xlu0 %v865_v62  ;;  %v628_v31 = vrot.slane %v621_v30, %v620_v9 }
  0xa7   :  { %v870_v5 = vpop.xlane.xlu0 %869  ;;  %634 = vst.msk [vmem:[#allocation6] sm:$0x3] %vm632_vm0, %v628_v31 }
  0xa9   :  { %v1788_v27 = vpop.xlane.xlu1 %872 }
  0xad   :  { %v1794_v33 = vpop.xlane.xlu1 %875 }
  0xb1   :  { %v1797_v59 = vpop.xlane.xlu1 %878 }
  0xb8   :  { %v354_v40 = vpop.xlane.xlu1 %353 }
  0xba   :  { %v348_v14 = vpop.xlane.xlu0 %347 }
  0xbb   :  { %1296 = vlog2.f32 %v348_v14 }
  0xbc   :  { %v357_v16 = vpop.xlane.xlu1 %356 }
  0xbe   :  { %v351_v23 = vpop.xlane.xlu0 %350 }
  0xbf   :  { %1298 = vlog2.f32 %v351_v23 }
  0xc0   :  { %v363_v44 = vpop.xlane.xlu1 %362 }
  0xc2   :  { %v360_v39 = vpop.xlane.xlu0 %359 }
  0xc4   :  { %v369_v61 = vpop.xlane.xlu1 %368 }
  0xc5   :  { %v1297_v10 = vpop.eup %1296 }
  0xc6   :  { %v443_v24 = vmul.f32 0.6931472, %v1297_v10  ;;  %v366_v34 = vpop.xlane.xlu0 %365 }
  0xc8   :  { %v1801_v52 = vpop.xlane.xlu1 %881 }
  0xc9   :  { %1393 = shalt.err (!%p1390_p12)
}
  0xca   :  { %s1394_s27 = scalar_lea.hbm %s1872_s2, 32 }
  0xcb   :  { %p1395_p13 = scmp.ne.s32.totalorder %s1872_s2, %s1394_s27  ;;  %p1398_p0 = scmp.lt.u32.totalorder %s1394_s27, %s1872_s2 }
  0xcd   :  { %p1400_p1 = pnand %p1398_p0, %p1395_p13 }
  0xcf   :  { %1403 = shalt.err (!%p1400_p1)
}
  0xd0   :  { %1086 = dma.vmem_to_hbm [thread:$0]  %s1084_s23, 32, %s1872_s2, [#allocation7]   ;;  %v1299_v0 = vpop.eup %1298  ;;  %v506_v1 = vadd.f32 20.0, %v443_v24  ;;  %v372_v63 = vpop.xlane.xlu0 %371  ;;  %v965_v19 = vmul.f32 40.0, %v1788_v27  ;;  %v964_v58 = vmul.f32 40.0, %v870_v5  ;;  %1300 = vlog2.f32 %v354_v40 }
  0xd1   :  { %v445_v43 = vmul.f32 0.6931472, %v1299_v0  ;;  %v885_v45 = vpop.xlane.xlu1 %884  ;;  %1302 = vlog2.f32 %v357_v16  ;;  %v966_v6 = vmul.f32 40.0, %v1794_v33  ;;  %v967_v14 = vmul.f32 40.0, %v1797_v59  ;;  %s1437_s2 = smov [#allocation5]  }
  0xd2   :  { %v996_v35 = vsub.f32 %v506_v1, %v964_v58  ;;  %1304 = vlog2.f32 %v360_v39  ;;  %v968_v36 = vmul.f32 40.0, %v1801_v52  ;;  %v969_v32 = vmul.f32 40.0, %v885_v45  ;;  %s1073_s6 = sshll.u32 %s1437_s2, 4  ;;  %s1074_s6 = int_to_ptr.vmem [resolvable:$true] %s1073_s6 }
  0xd3   :  { %v507_v18 = vadd.f32 20.0, %v445_v43  ;;  %1306 = vlog2.f32 %v363_v44  ;;  %vm1065_vm1 = vcmask 0   ;;  %s1404_s7 = scalar_lea.vmem %s1074_s6, 16  ;;  %s1408_s8 = scalar_lea.vmem %s1074_s6, 32 }
  0xd4   :  { %v375_v47 = vpop.xlane.xlu0 %374  ;;  %1308 = vlog2.f32 %v366_v34  ;;  %p1405_p2 = scmp.ne.s32.totalorder %s1074_s6, %s1404_s7  ;;  %p1409_p3 = scmp.lt.s32.totalorder %s1074_s6, %s1074_s6 }
  0xd5   :  { %v997_v38 = vsub.f32 %v507_v18, %v965_v19  ;;  %v888_v29 = vpop.xlane.xlu1 %887  ;;  %1310 = vlog2.f32 %v369_v61  ;;  %p1410_p4 = scmp.lt.s32.totalorder %s1408_s8, %s1404_s7 }
  0xd6   :  { %1312 = vlog2.f32 %v372_v63  ;;  %v970_v24 = vmul.f32 40.0, %v888_v29 }
  0xd7   :  { %v1028_v54 = vadd.f32 %v997_v38, %v996_v35  ;;  %1314 = vlog2.f32 %v375_v47  ;;  %p1411_p5 = por %p1410_p4, %p1409_p3 }
  0xd8   :  { %v378_v51 = vpop.xlane.xlu0 %377 }
  0xd9   :  { %v1816_v55 = vpop.xlane.xlu1 %890  ;;  %1316 = vlog2.f32 %v378_v51  ;;  %p1412_p6 = pnand %p1411_p5, %p1405_p2 }
  0xda   :  { %v1301_v53 = vpop.eup %1300  ;;  %v971_v43 = vmul.f32 40.0, %v1816_v55 }
  0xdb   :  { %v447_v28 = vmul.f32 0.6931472, %v1301_v53  ;;  %v1303_v8 = vpop.eup %1302 }
  0xdc   :  { %v381_v49 = vpop.xlane.xlu0 %380  ;;  %v449_v48 = vmul.f32 0.6931472, %v1303_v8  ;;  %v1305_v3 = vpop.eup %1304 }
  0xdd   :  { %v1818_v50 = vpop.xlane.xlu1 %893  ;;  %v508_v46 = vadd.f32 20.0, %v447_v28  ;;  %v1307_v57 = vpop.eup %1306  ;;  %v451_v2 = vmul.f32 0.6931472, %v1305_v3  ;;  %1318 = vlog2.f32 %v381_v49 }
  0xde   :  { %v509_v40 = vadd.f32 20.0, %v449_v48  ;;  %v453_v15 = vmul.f32 0.6931472, %v1307_v57  ;;  %v1309_v26 = vpop.eup %1308  ;;  %v972_v29 = vmul.f32 40.0, %v1818_v50 }
  0xdf   :  { %v998_v60 = vsub.f32 %v508_v46, %v966_v6  ;;  %v510_v17 = vadd.f32 20.0, %v451_v2  ;;  %v1311_v41 = vpop.eup %1310  ;;  %v455_v42 = vmul.f32 0.6931472, %v1309_v26 }
  0xe0   :  { %v384_v62 = vpop.xlane.xlu0 %383  ;;  %v999_v4 = vsub.f32 %v509_v40, %v967_v14  ;;  %v511_v23 = vadd.f32 20.0, %v453_v15  ;;  %v457_v39 = vmul.f32 0.6931472, %v1311_v41  ;;  %v1313_v34 = vpop.eup %1312 }
  0xe1   :  { %v1820_v11 = vpop.xlane.xlu1 %896  ;;  %v1029_v20 = vadd.f32 %v1028_v54, %v998_v60  ;;  %v1000_v59 = vsub.f32 %v510_v17, %v968_v36  ;;  %v512_v31 = vadd.f32 20.0, %v455_v42  ;;  %1320 = vlog2.f32 %v384_v62  ;;  %v1315_v63 = vpop.eup %1314 }
  0xe2   :  { %v1001_v61 = vsub.f32 %v511_v23, %v969_v32  ;;  %v513_v0 = vadd.f32 20.0, %v457_v39  ;;  %v459_v58 = vmul.f32 0.6931472, %v1313_v34  ;;  %v461_v38 = vmul.f32 0.6931472, %v1315_v63 }
  0xe3   :  { %v1030_v25 = vadd.f32 %v1029_v20, %v999_v4  ;;  %v1002_v18 = vsub.f32 %v512_v31, %v970_v24  ;;  %v1317_v35 = vpop.eup %1316  ;;  %v973_v55 = vmul.f32 40.0, %v1820_v11 }
  0xe4   :  { %v387_v13 = vpop.xlane.xlu0 %386  ;;  %v1003_v54 = vsub.f32 %v513_v0, %v971_v43  ;;  %v514_v62 = vadd.f32 20.0, %v459_v58  ;;  %v515_v8 = vadd.f32 20.0, %v461_v38 }
  0xe5   :  { %v1822_v27 = vpop.xlane.xlu1 %899  ;;  %v1031_v30 = vadd.f32 %v1030_v25, %v1000_v59  ;;  %1322 = vlog2.f32 %v387_v13  ;;  %v463_v13 = vmul.f32 0.6931472, %v1317_v35 }
  0xe6   :  { %v1004_v46 = vsub.f32 %v514_v62, %v972_v29  ;;  %v974_v3 = vmul.f32 40.0, %v1822_v27 }
  0xe7   :  { %v1032_v1 = vadd.f32 %v1031_v30, %v1001_v61  ;;  %v1319_v49 = vpop.eup %1318  ;;  %v516_v57 = vadd.f32 20.0, %v463_v13 }
  0xe8   :  { %v390_v37 = vpop.xlane.xlu0 %389  ;;  %v465_v48 = vmul.f32 0.6931472, %v1319_v49 }
  0xe9   :  { %v1824_v21 = vpop.xlane.xlu1 %902  ;;  %1324 = vlog2.f32 %v390_v37  ;;  %v1033_v47 = vadd.f32 %v1032_v1, %v1002_v18  ;;  %v1006_v20 = vsub.f32 %v516_v57, %v974_v3 }
  0xea   :  { %v975_v40 = vmul.f32 40.0, %v1824_v21  ;;  %v517_v14 = vadd.f32 20.0, %v465_v48 }
  0xeb   :  { %v1321_v28 = vpop.eup %1320  ;;  %v1034_v37 = vadd.f32 %v1033_v47, %v1003_v54 }
  0xec   :  { %v393_v12 = vpop.xlane.xlu0 %392  ;;  %v467_v60 = vmul.f32 0.6931472, %v1321_v28  ;;  %v1007_v26 = vsub.f32 %v517_v14, %v975_v40 }
  0xed   :  { %v1826_v56 = vpop.xlane.xlu1 %905  ;;  %1326 = vlog2.f32 %v393_v12  ;;  %v1005_v12 = vsub.f32 %v515_v8, %v973_v55 }
  0xee   :  { %v976_v4 = vmul.f32 40.0, %v1826_v56 }
  0xef   :  { %v1323_v50 = vpop.eup %1322 }
  0xf0   :  { %v396_v5 = vpop.xlane.xlu0 %395  ;;  %v469_v15 = vmul.f32 0.6931472, %v1323_v50 }
  0xf1   :  { %v1829_v7 = vpop.xlane.xlu1 %908  ;;  %1328 = vlog2.f32 %v396_v5  ;;  %v1035_v5 = vadd.f32 %v1034_v37, %v1004_v46 }
  0xf2   :  { %v977_v23 = vmul.f32 40.0, %v1829_v7 }
  0xf3   :  { %v1325_v2 = vpop.eup %1324  ;;  %v1036_v36 = vadd.f32 %v1035_v5, %v1005_v12 }
  0xf4   :  { %v399_v22 = vpop.xlane.xlu0 %398  ;;  %v471_v32 = vmul.f32 0.6931472, %v1325_v2 }
  0xf5   :  { %v1832_v16 = vpop.xlane.xlu1 %911  ;;  %1330 = vlog2.f32 %v399_v22  ;;  %v518_v22 = vadd.f32 20.0, %v467_v60  ;;  %v1037_v41 = vadd.f32 %v1036_v36, %v1006_v20 }
  0xf6   :  { %v978_v30 = vmul.f32 40.0, %v1832_v16  ;;  %v520_v24 = vadd.f32 20.0, %v471_v32 }
  0xf7   :  { %v1327_v27 = vpop.eup %1326  ;;  %v1008_v42 = vsub.f32 %v518_v22, %v976_v4 }
  0xf8   :  { %v402_v33 = vpop.xlane.xlu0 %401  ;;  %v473_v39 = vmul.f32 0.6931472, %v1327_v27  ;;  %v1010_v58 = vsub.f32 %v520_v24, %v978_v30 }
  0xf9   :  { %v1835_v44 = vpop.xlane.xlu1 %914  ;;  %1332 = vlog2.f32 %v402_v33  ;;  %v519_v33 = vadd.f32 20.0, %v469_v15 }
  0xfa   :  { %v979_v7 = vmul.f32 40.0, %v1835_v44  ;;  %v521_v43 = vadd.f32 20.0, %v473_v39 }
  0xfb   :  { %v1329_v21 = vpop.eup %1328  ;;  %v1009_v61 = vsub.f32 %v519_v33, %v977_v23 }
  0xfc   :  { %v405_v9 = vpop.xlane.xlu0 %404  ;;  %v475_v34 = vmul.f32 0.6931472, %v1329_v21  ;;  %v1011_v54 = vsub.f32 %v521_v43, %v979_v7 }
  0xfd   :  { %v1837_v10 = vpop.xlane.xlu1 %917  ;;  %1334 = vlog2.f32 %v405_v9  ;;  %v1038_v9 = vadd.f32 %v1037_v41, %v1007_v26 }
  0xfe   :  { %v980_v18 = vmul.f32 40.0, %v1837_v10  ;;  %v522_v38 = vadd.f32 20.0, %v475_v34 }
  0xff   :  { %v1331_v56 = vpop.eup %1330 }
 0x100   :  { %v408_v52 = vpop.xlane.xlu0 %407  ;;  %v477_v63 = vmul.f32 0.6931472, %v1331_v56  ;;  %v1012_v55 = vsub.f32 %v522_v38, %v980_v18 }
 0x101   :  { %v1840_v19 = vpop.xlane.xlu1 %920  ;;  %1336 = vlog2.f32 %v408_v52  ;;  %v1039_v52 = vadd.f32 %v1038_v9, %v1008_v42 }
 0x102   :  { %v981_v29 = vmul.f32 40.0, %v1840_v19  ;;  %v523_v49 = vadd.f32 20.0, %v477_v63 }
 0x103   :  { %v1333_v0 = vpop.eup %1332  ;;  %v1040_v35 = vadd.f32 %v1039_v52, %v1009_v61 }
 0x104   :  { %v411_v45 = vpop.xlane.xlu0 %410  ;;  %v479_v47 = vmul.f32 0.6931472, %v1333_v0  ;;  %v1013_v48 = vsub.f32 %v523_v49, %v981_v29 }
 0x105   :  { %v1843_v51 = vpop.xlane.xlu1 %923  ;;  %1338 = vlog2.f32 %v411_v45  ;;  %v1041_v62 = vadd.f32 %v1040_v35, %v1010_v58 }
 0x106   :  { %v982_v13 = vmul.f32 40.0, %v1843_v51  ;;  %v524_v37 = vadd.f32 20.0, %v479_v47 }
 0x107   :  { %v1335_v45 = vpop.eup %1334  ;;  %v1042_v46 = vadd.f32 %v1041_v62, %v1011_v54 }
 0x108   :  { %v414_v53 = vpop.xlane.xlu0 %413  ;;  %v481_v28 = vmul.f32 0.6931472, %v1335_v45  ;;  %v1014_v57 = vsub.f32 %v524_v37, %v982_v13 }
 0x109   :  { %v1847_v6 = vpop.xlane.xlu1 %926  ;;  %1340 = vlog2.f32 %v414_v53  ;;  %v1043_v19 = vadd.f32 %v1042_v46, %v1012_v55 }
 0x10a   :  { %v983_v50 = vmul.f32 40.0, %v1847_v6  ;;  %v525_v60 = vadd.f32 20.0, %v481_v28 }
 0x10b   :  { %v1337_v44 = vpop.eup %1336  ;;  %v1044_v5 = vadd.f32 %v1043_v19, %v1013_v48 }
 0x10c   :  { %v417_v11 = vpop.xlane.xlu0 %416  ;;  %v483_v3 = vmul.f32 0.6931472, %v1337_v44  ;;  %v1015_v4 = vsub.f32 %v525_v60, %v983_v50 }
 0x10d   :  { %v930_v17 = vpop.xlane.xlu1 %929  ;;  %1342 = vlog2.f32 %v417_v11  ;;  %v1045_v6 = vadd.f32 %v1044_v5, %v1014_v57 }
 0x10e   :  { %v984_v11 = vmul.f32 40.0, %v930_v17  ;;  %v526_v15 = vadd.f32 20.0, %v483_v3 }
 0x10f   :  { %v1339_v8 = vpop.eup %1338  ;;  %v1046_v33 = vadd.f32 %v1045_v6, %v1015_v4 }
 0x110   :  { %v420_v25 = vpop.xlane.xlu0 %419  ;;  %v485_v40 = vmul.f32 0.6931472, %v1339_v8  ;;  %v1016_v26 = vsub.f32 %v526_v15, %v984_v11 }
 0x111   :  { %v933_v59 = vpop.xlane.xlu1 %932  ;;  %1344 = vlog2.f32 %v420_v25 }
 0x112   :  { %v985_v27 = vmul.f32 40.0, %v933_v59  ;;  %v527_v36 = vadd.f32 20.0, %v485_v40  ;;  %v1047_v56 = vadd.f32 %v1046_v33, %v1016_v26 }
 0x113   :  { %v1341_v12 = vpop.eup %1340 }
 0x114   :  { %v423_v31 = vpop.xlane.xlu0 %422  ;;  %v487_v20 = vmul.f32 0.6931472, %v1341_v12  ;;  %v1017_v41 = vsub.f32 %v527_v36, %v985_v27 }
 0x115   :  { %v936_v1 = vpop.xlane.xlu1 %935  ;;  %1346 = vlog2.f32 %v423_v31 }
 0x116   :  { %v986_v23 = vmul.f32 40.0, %v936_v1  ;;  %v528_v17 = vadd.f32 20.0, %v487_v20  ;;  %v1048_v0 = vadd.f32 %v1047_v56, %v1017_v41 }
 0x117   :  { %v1343_v14 = vpop.eup %1342 }
 0x118   :  { %v426_v16 = vpop.xlane.xlu0 %425  ;;  %v489_v32 = vmul.f32 0.6931472, %v1343_v14  ;;  %v1018_v9 = vsub.f32 %v528_v17, %v986_v23 }
 0x119   :  { %v939_v53 = vpop.xlane.xlu1 %938 }
 0x11a   :  { %v987_v39 = vmul.f32 40.0, %v939_v53  ;;  %v529_v31 = vadd.f32 20.0, %v489_v32  ;;  %v1049_v63 = vadd.f32 %v1048_v0, %v1018_v9 }
 0x11b   :  { %v1345_v22 = vpop.eup %1344 }
 0x11c   :  { %v429_v10 = vpop.xlane.xlu0 %428  ;;  %v491_v42 = vmul.f32 0.6931472, %v1345_v22  ;;  %v1019_v1 = vsub.f32 %v529_v31, %v987_v39 }
 0x11d   :  { %1348 = vlog2.f32 %v429_v10  ;;  %v942_v2 = vpop.xlane.xlu1 %941 }
 0x11e   :  { %1350 = vlog2.f32 %v426_v16  ;;  %v988_v34 = vmul.f32 40.0, %v942_v2  ;;  %v530_v52 = vadd.f32 20.0, %v491_v42  ;;  %v1050_v29 = vadd.f32 %v1049_v63, %v1019_v1 }
 0x11f   :  { %v1347_v21 = vpop.eup %1346 }
 0x120   :  { %v432_v51 = vpop.xlane.xlu0 %431  ;;  %v493_v24 = vmul.f32 0.6931472, %v1347_v21  ;;  %v1020_v38 = vsub.f32 %v530_v52, %v988_v34 }
 0x121   :  { %1352 = vlog2.f32 %v432_v51  ;;  %v945_v30 = vpop.xlane.xlu1 %944 }
 0x122   :  { %v989_v43 = vmul.f32 40.0, %v945_v30  ;;  %v531_v16 = vadd.f32 20.0, %v493_v24  ;;  %v1051_v28 = vadd.f32 %v1050_v29, %v1020_v38 }
 0x124   :  { %v435_v25 = vpop.xlane.xlu0 %434  ;;  %v1021_v44 = vsub.f32 %v531_v16, %v989_v43 }
 0x125   :  { %1354 = vlog2.f32 %v435_v25  ;;  %v951_v47 = vpop.xlane.xlu1 %950 }
 0x126   :  { %v991_v55 = vmul.f32 40.0, %v951_v47  ;;  %v1052_v48 = vadd.f32 %v1051_v28, %v1021_v44 }
 0x127   :  { %v1349_v59 = vpop.eup %1348 }
 0x128   :  { %v438_v61 = vpop.xlane.xlu0 %437  ;;  %v1351_v7 = vpop.eup %1350  ;;  %v497_v58 = vmul.f32 0.6931472, %v1349_v59 }
 0x129   :  { %1356 = vlog2.f32 %v438_v61  ;;  %v495_v45 = vmul.f32 0.6931472, %v1351_v7  ;;  %v957_v37 = vpop.xlane.xlu1 %956 }
 0x12a   :  { %v533_v49 = vadd.f32 20.0, %v497_v58  ;;  %v993_v19 = vmul.f32 40.0, %v957_v37 }
 0x12b   :  { %v1353_v35 = vpop.eup %1352  ;;  %v532_v53 = vadd.f32 20.0, %v495_v45 }
 0x12c   :  { %v441_v18 = vpop.xlane.xlu0 %440  ;;  %v499_v62 = vmul.f32 0.6931472, %v1353_v35  ;;  %v1023_v12 = vsub.f32 %v533_v49, %v991_v55 }
 0x12d   :  { %1358 = vlog2.f32 %v441_v18  ;;  %v963_v5 = vpop.xlane.xlu1 %962 }
 0x12e   :  { %v534_v50 = vadd.f32 20.0, %v499_v62  ;;  %v995_v27 = vmul.f32 40.0, %v963_v5 }
 0x12f   :  { %v1355_v54 = vpop.eup %1354 }
 0x130   :  { %v948_v13 = vpop.xlane.xlu0 %947  ;;  %v501_v10 = vmul.f32 0.6931472, %v1355_v54 }
 0x131   :  { %v990_v8 = vmul.f32 40.0, %v948_v13 }
 0x132   :  { %v535_v60 = vadd.f32 20.0, %v501_v10 }
 0x133   :  { %v1357_v46 = vpop.eup %1356  ;;  %v1022_v3 = vsub.f32 %v532_v53, %v990_v8 }
 0x134   :  { %v954_v57 = vpop.xlane.xlu0 %953  ;;  %v503_v40 = vmul.f32 0.6931472, %v1357_v46  ;;  %v1025_v22 = vsub.f32 %v535_v60, %v993_v19 }
 0x135   :  { %v1053_v11 = vadd.f32 %v1052_v48, %v1022_v3  ;;  %v992_v51 = vmul.f32 40.0, %v954_v57 }
 0x136   :  { %v536_v6 = vadd.f32 20.0, %v503_v40 }
 0x137   :  { %v1359_v2 = vpop.eup %1358  ;;  %v1054_v14 = vadd.f32 %v1053_v11, %v1023_v12  ;;  %v1024_v15 = vsub.f32 %v534_v50, %v992_v51 }
 0x138   :  { %v505_v20 = vmul.f32 0.6931472, %v1359_v2  ;;  %v960_v4 = vpop.xlane.xlu0 %959 }
 0x139   :  { %v1055_v36 = vadd.f32 %v1054_v14, %v1024_v15  ;;  %v994_v26 = vmul.f32 40.0, %v960_v4 }
 0x13a   :  { %v537_v23 = vadd.f32 20.0, %v505_v20 }
 0x13b   :  { %v1056_v25 = vadd.f32 %v1055_v36, %v1025_v22  ;;  %v1026_v32 = vsub.f32 %v536_v6, %v994_v26 }
 0x13c   :  { %v1027_v21 = vsub.f32 %v537_v23, %v995_v27 }
 0x13d   :  { %v1057_v17 = vadd.f32 %v1056_v25, %v1026_v32 }
 0x13f   :  { %v1058_v33 = vadd.f32 %v1057_v17, %v1027_v21 }
 0x141   :  { %v1059_v41 = vrot.slane %v1058_v33, 4 }
 0x143   :  { %v1060_v42 = vadd.f32 %v1059_v41, %v1058_v33 }
 0x145   :  { %v1061_v39 = vrot.slane %v1060_v42, 2 }
 0x147   :  { %v1062_v30 = vadd.f32 %v1061_v39, %v1060_v42 }
 0x149   :  { %v1063_v56 = vrot.slane %v1062_v30, 1 }
 0x14b   :  { %v1064_v9 = vadd.f32 %v1063_v56, %v1062_v30 }
 0x14d   :  { %1066 = vst.msk [vmem:[#allocation5] sm:$0x1] %vm1065_vm1, %v1064_v9 }
 0x14e   :  { %1415 = shalt.err (!%p1412_p6)
}
 0x14f   :  { %s1416_s11 = scalar_lea.hbm %s1871_s1, 16 }
 0x150   :  { %p1417_p7 = scmp.ne.s32.totalorder %s1871_s1, %s1416_s11  ;;  %p1420_p8 = scmp.lt.u32.totalorder %s1416_s11, %s1871_s1 }
 0x152   :  { %p1422_p9 = pnand %p1420_p8, %p1417_p7 }
 0x154   :  { %1425 = shalt.err (!%p1422_p9)
}
 0x155   :  { %1076 = dma.vmem_to_hbm [thread:$0]  %s1074_s6, 16, %s1871_s1, [#allocation4]  }
 0x156   :  { %1428 = dma.done.wait [#allocation4], 16  }
 0x157   :  { %1429 = vsyncadd [#allocation4], 4294967280 }
 0x158   :  { %1430 = dma.done.wait [#allocation7], 32  }
 0x159   :  { %1431 = vsyncadd [#allocation7], 4294967264 }
 0x15a   :  { %1093 = vsyncpa [#allocation3], 1 }
 0x15b   :  { %1094 = vsyncpa [#allocation4], 1 }
 0x15c   :  { %1095 = vsyncpa [#allocation7], 1 }

</bundles_post_ra>
